<compile_context>
chip_gen: v7x
topology: tpu7x:2x2x1
jax: 0.10.0
libtpu: 0.0.40
codegen_flags: <defaults>
</compile_context>

<pallas_src>
import functools
import math

import jax
import jax.numpy as jnp
from jax import lax
from jax.experimental import pallas as pl
from jax.experimental.pallas import tpu as pltpu

_LANE = 128
_TARGET_BLOCK_BYTES = 4 << 20  # ~4 MiB output per grid step (2x-buffered fits v5e/v6e/v7x)


# ---------------------------------------------------------------------------
# Tiling helpers
# ---------------------------------------------------------------------------
def _round_up(x, m):
    return (x + m - 1) // m * m


def _row_tile(num_rows, row_bytes):
    """Output-slab row tile: <= ~_TARGET_BLOCK_BYTES per block (dtype-aware via
    row_bytes), a multiple of 16 rows (bf16 sublane packing), and >= 2 grid
    steps (prefer an even count) so both v7x TensorCores get work."""
    if num_rows < 32:
        return num_rows                       # tiny table: one full-array block
    cap = max(16, (_TARGET_BLOCK_BYTES // max(row_bytes, 1)) // 16 * 16)
    tile = min(cap, _round_up(pl.cdiv(num_rows, 2), 16))   # never a single step
    steps = pl.cdiv(num_rows, tile)
    if steps > 1 and steps % 2 == 1:          # avoid one TC idling on the tail
        tile = max(16, min(tile, _round_up(pl.cdiv(num_rows, steps + 1), 16)))
    return tile


def _lane_dense_params(dim):
    """Lane width L (multiple of 128) and positions-per-row k for the slab."""
    if dim % _LANE == 0:
        return None                            # general path is already lane-dense
    L = math.lcm(dim, _LANE)
    if L > 1024:
        return None                            # slab too wide; fall back
    return L, L // dim


# ---------------------------------------------------------------------------
# Kernels
# ---------------------------------------------------------------------------
def _lane_dense_iota_kernel(tf_ref, lg_ref, out_ref, *, k, offset, scale):
    # tf_ref: [1, L] f32 = tile(freqs_full, k)          (VMEM-resident)
    # lg_ref: [1, L] f32 = lane // dim                  (VMEM-resident)
    # out_ref: [TMR, L]  lane-dense row-major slab of the [S, dim] table.
    # Position for (slab row r, lane l) = (program_id*TMR + r)*k + (l // dim).
    tmr = out_ref.shape[0]
    row0 = (pl.program_id(0) * tmr).astype(jnp.float32)
    r = lax.broadcasted_iota(jnp.int32, out_ref.shape, 0).astype(jnp.float32)
    pos = (row0 + r) * float(k) + lg_ref[...]
    if offset:
        pos = pos + float(offset)
    if scale is not None:
        pos = pos / float(scale)
    out_ref[...] = (pos * tf_ref[...]).astype(out_ref.dtype)


def _outer_iota_kernel(freqs_ref, out_ref, *, offset, scale):
    # freqs_ref: [1, D] f32 (VMEM-resident), out_ref: [TM, D]
    tm = out_ref.shape[0]
    row0 = (pl.program_id(0) * tm).astype(jnp.float32)
    r = lax.broadcasted_iota(jnp.int32, out_ref.shape, 0).astype(jnp.float32)
    pos = row0 + r
    if offset:
        pos = pos + float(offset)
    if scale is not None:
        pos = pos / float(scale)
    out_ref[...] = (pos * freqs_ref[...]).astype(out_ref.dtype)


def _lane_dense_pos_kernel(pos_ref, bd_ref, out_ref, *, k):
    # pos_ref: [TMR, k] f32  (k consecutive positions per slab row)
    # bd_ref:  [k, L]   f32  block-"diagonal": bd[j, j*dim:(j+1)*dim] = freqs_full
    # out_ref: [TMR, L]
    # Exact f32: each output lane gets exactly one nonzero pos*freq product;
    # the other (k-1) terms are exact zeros -> bit-equal to the outer product.
    acc = pos_ref[:, 0:1] * bd_ref[0:1, :]
    for j in range(1, k):
        acc = acc + pos_ref[:, j:j + 1] * bd_ref[j:j + 1, :]
    out_ref[...] = acc.astype(out_ref.dtype)


def _outer_pos_kernel(pos_ref, freqs_ref, out_ref):
    # pos_ref: [TM, 1] f32, freqs_ref: [1, D] f32 (resident), out_ref: [TM, D]
    out_ref[...] = (pos_ref[...] * freqs_ref[...]).astype(out_ref.dtype)


# ---------------------------------------------------------------------------
# Wrappers
# ---------------------------------------------------------------------------
def _cost(S, D, itemsize, read_positions=False):
    return pl.CostEstimate(flops=S * D, transcendentals=0,
                           bytes_accessed=S * D * itemsize + (S * 4 if read_positions else 0))


def _rope_table_arange(S, D, offset, scale, freqs_full, aux, out_dtype):
    """[S, D] table for positions = (arange(S) + offset) / scale, iota in-kernel."""
    itemsize = jnp.dtype(out_dtype).itemsize
    cparams = pltpu.CompilerParams(dimension_semantics=("parallel",))
    if aux is not None:
        L, k = aux["L"], aux["k"]
        rows = pl.cdiv(S, k)
        S_pad = rows * k
        tmr = _row_tile(rows, L * itemsize)
        out_flat = pl.pallas_call(
            functools.partial(_lane_dense_iota_kernel, k=k, offset=offset, scale=scale),
            out_shape=jax.ShapeDtypeStruct((rows, L), out_dtype),
            grid=(pl.cdiv(rows, tmr),),
            in_specs=[
                pl.BlockSpec((1, L), lambda i: (0, 0)),    # tiled freqs (resident)
                pl.BlockSpec((1, L), lambda i: (0, 0)),    # lane-group   (resident)
            ],
            out_specs=pl.BlockSpec((tmr, L), lambda i: (i, 0)),
            compiler_params=cparams,
            cost_estimate=_cost(S, D, itemsize),
        )(aux["tiled_freqs"], aux["lane_group"])
        out = out_flat.reshape(S_pad, D)            # row-major reshape (no data movement)
        return out[:S] if S_pad != S else out
    # General path (D % 128 == 0, or slab not applicable).
    tm = _row_tile(S, D * itemsize)
    return pl.pallas_call(
        functools.partial(_outer_iota_kernel, offset=offset, scale=scale),
        out_shape=jax.ShapeDtypeStruct((S, D), out_dtype),
        grid=(pl.cdiv(S, tm),),
        in_specs=[pl.BlockSpec((1, D), lambda i: (0, 0))],
        out_specs=pl.BlockSpec((tm, D), lambda i: (i, 0)),
        compiler_params=cparams,
        cost_estimate=_cost(S, D, itemsize),
    )(freqs_full.reshape(1, D))


def _rope_table_from_positions(positions, D, freqs_full, aux, out_dtype):
    """[S, D] table = positions ⊗ freqs_full for arbitrary (already scaled) positions."""
    positions = positions.astype(jnp.float32).reshape(-1)
    S = positions.shape[0]
    itemsize = jnp.dtype(out_dtype).itemsize
    cparams = pltpu.CompilerParams(dimension_semantics=("parallel",))
    if aux is not None and aux["k"] <= 8:
        L, k = aux["L"], aux["k"]
        rows = pl.cdiv(S, k)
        S_pad = rows * k
        if S_pad != S:                              # pad so lane-dense always fires
            positions = jnp.pad(positions, (0, S_pad - S))
        tmr = _row_tile(rows, L * itemsize)
        out_flat = pl.pallas_call(
            functools.partial(_lane_dense_pos_kernel, k=k),
            out_shape=jax.ShapeDtypeStruct((rows, L), out_dtype),
            grid=(pl.cdiv(rows, tmr),),
            in_specs=[
                pl.BlockSpec((tmr, k), lambda i: (i, 0)),
                pl.BlockSpec((k, L), lambda i: (0, 0)),   # block-diag freqs (resident)
            ],
            out_specs=pl.BlockSpec((tmr, L), lambda i: (i, 0)),
            compiler_params=cparams,
            cost_estimate=_cost(S, D, itemsize, read_positions=True),
        )(positions.reshape(rows, k), aux["block_diag"])
        out = out_flat.reshape(S_pad, D)
        return out[:S] if S_pad != S else out
    # General fallback (masked stores if D is not a multiple of 128 — correct).
    tm = _row_tile(S, D * itemsize)
    return pl.pallas_call(
        _outer_pos_kernel,
        out_shape=jax.ShapeDtypeStruct((S, D), out_dtype),
        grid=(pl.cdiv(S, tm),),
        in_specs=[
            pl.BlockSpec((tm, 1), lambda i: (i, 0)),
            pl.BlockSpec((1, D), lambda i: (0, 0)),        # resident
        ],
        out_specs=pl.BlockSpec((tm, D), lambda i: (i, 0)),
        compiler_params=cparams,
        cost_estimate=_cost(S, D, itemsize, read_positions=True),
    )(positions.reshape(S, 1), freqs_full.reshape(1, D))


# ---------------------------------------------------------------------------
# Module
# ---------------------------------------------------------------------------
class RotaryEmbedding:
    """JAX/Pallas port of nanotron RotaryEmbedding (forward pass only)."""

    def __init__(self, dim, max_seq_len, base=10000.0, interleaved=True,
                 seq_len_scaling_factor=None, out_dtype=jnp.float32):
        self.dim = dim
        self.max_seq_len = max_seq_len
        self.interleaved = interleaved
        self.seq_len_scaling_factor = seq_len_scaling_factor
        self.out_dtype = out_dtype  # set jnp.bfloat16 if the RoPE consumer is bf16
        # "Buffer" init, same formula as the PyTorch module.
        self.freqs_cis = 1.0 / (
            base ** (jnp.arange(0, dim, 2, dtype=jnp.float32) / dim)
        )
        # Hoisted per-call glue: expand dim/2 freqs to full table width once.
        if interleaved:
            self.freqs_full = jnp.repeat(self.freqs_cis, 2)            # [f0,f0,f1,f1,...]
        else:
            self.freqs_full = jnp.concatenate([self.freqs_cis, self.freqs_cis])
        self.table_dim = int(self.freqs_full.shape[0])
        # Cached per-dim constants for the lane-dense slab kernels.
        params = _lane_dense_params(self.table_dim)
        if params is not None:
            L, k = params
            self.aux = dict(
                L=L, k=k,
                tiled_freqs=jnp.tile(self.freqs_full, k).reshape(1, L),
                lane_group=(jnp.arange(L, dtype=jnp.int32) // self.table_dim)
                .astype(jnp.float32).reshape(1, L),
                block_diag=jnp.kron(jnp.eye(k, dtype=jnp.float32),
                                    self.freqs_full[None, :]),          # [k, L]
            )
        else:
            self.aux = None

    def __call__(self, seq_length=None, position_offset=0, position_ids=None):
        if position_ids is not None:
            assert seq_length is None, "seq_length must be None if position_ids is provided"
            assert position_offset == 0, "position_offset must be 0 if position_ids is provided"
            positions = jnp.asarray(position_ids, dtype=jnp.float32).reshape(-1)
            # Mirror the PyTorch buffer update, but keep it host-side so a traced
            # value never leaks into later static shapes (skip under jit tracing).
            if not isinstance(positions, jax.core.Tracer):
                self.max_seq_len = int(jnp.max(positions)) + 1
            if self.seq_len_scaling_factor is not None:
                positions = positions / self.seq_len_scaling_factor
            return _rope_table_from_positions(positions, self.table_dim,
                                              self.freqs_full, self.aux, self.out_dtype)

        seq_length = int(seq_length) if seq_length else int(self.max_seq_len)
        self.max_seq_len = seq_length
        if isinstance(position_offset, (int, float)):
            # Static offset: positions are generated in-kernel (no [S] HBM array).
            return _rope_table_arange(seq_length, self.table_dim, float(position_offset),
                                      self.seq_len_scaling_factor, self.freqs_full,
                                      self.aux, self.out_dtype)
        # Traced offset: build positions and use the positions-input kernels.
        positions = jnp.arange(seq_length, dtype=jnp.float32) + position_offset
        if self.seq_len_scaling_factor is not None:
            positions = positions / self.seq_len_scaling_factor
        return _rope_table_from_positions(positions, self.table_dim,
                                          self.freqs_full, self.aux, self.out_dtype)


# ---------------------------------------------------------------------------
# Pure-JAX reference mirroring the PyTorch code line-by-line (for checking).
# ---------------------------------------------------------------------------
def _ref_forward(positions, freqs_cis, interleaved):
    pf = jnp.outer(positions.astype(jnp.float32), freqs_cis)
    if not interleaved:
        return jnp.concatenate([pf, pf], axis=-1)
    emb = jnp.stack([pf.reshape(-1, 1), pf.reshape(-1, 1)], axis=-1)
    return emb.reshape(pf.shape[0], -1)


if __name__ == "__main__":
    key = jax.random.PRNGKey(0)

    # --- dim=32 (< 128): lane-dense iota kernel, interleaved, arange + offset + scale
    dim, max_seq_len, seq = 32, 16, 8
    rope_i = RotaryEmbedding(dim=dim, max_seq_len=max_seq_len, interleaved=True,
                             seq_len_scaling_factor=2.0)
    out_i = jax.block_until_ready(rope_i(seq_length=seq, position_offset=3))
    pos_i = (jnp.arange(seq, dtype=jnp.float32) + 3) / 2.0
    ref_i = _ref_forward(pos_i, rope_i.freqs_cis, interleaved=True)
    assert out_i.shape == (seq, dim), out_i.shape
    assert jnp.allclose(out_i, ref_i, atol=1e-6, rtol=1e-6)

    # --- dim=32, interleaved=False, positions from random position_ids (input kernel)
    position_ids = jax.random.randint(key, (seq,), 0, max_seq_len)
    rope_n = RotaryEmbedding(dim=dim, max_seq_len=max_seq_len, interleaved=False)
    out_n = jax.block_until_ready(rope_n(position_ids=position_ids))
    ref_n = _ref_forward(position_ids.astype(jnp.float32), rope_n.freqs_cis,
                         interleaved=False)
    assert out_n.shape == (seq, dim), out_n.shape
    assert jnp.allclose(out_n, ref_n, atol=1e-6, rtol=1e-6)
    assert rope_n.max_seq_len == int(jnp.max(position_ids)) + 1

    # --- dim=128: general iota kernel (output already lane-dense) ---------------
    dim2, seq2 = 128, 16
    rope_w = RotaryEmbedding(dim=dim2, max_seq_len=seq2, interleaved=True)
    out_w = jax.block_until_ready(rope_w(seq_length=seq2))
    ref_w = _ref_forward(jnp.arange(seq2, dtype=jnp.float32), rope_w.freqs_cis,
                         interleaved=True)
    assert out_w.shape == (seq2, dim2), out_w.shape
    assert jnp.allclose(out_w, ref_w, atol=1e-6, rtol=1e-6)

    # --- dim=96 (128 ∤ dim): lcm lane-dense slab (L=384, k=4), ragged S (pad+slice)
    dim3, seq3 = 96, 10
    rope_l = RotaryEmbedding(dim=dim3, max_seq_len=seq3, interleaved=False)
    out_l = jax.block_until_ready(rope_l(seq_length=seq3))
    ref_l = _ref_forward(jnp.arange(seq3, dtype=jnp.float32), rope_l.freqs_cis,
                         interleaved=False)
    assert out_l.shape == (seq3, dim3), out_l.shape
    assert jnp.allclose(out_l, ref_l, atol=1e-6, rtol=1e-6)

    # --- dim=64, bf16 output, seq=256: multi-step grid (>=2 steps, x16 tiles) ----
    dim4, seq4 = 64, 256
    rope_b = RotaryEmbedding(dim=dim4, max_seq_len=seq4, interleaved=True,
                             out_dtype=jnp.bfloat16)
    out_b = jax.block_until_ready(rope_b(seq_length=seq4))
    ref_b = _ref_forward(jnp.arange(seq4, dtype=jnp.float32), rope_b.freqs_cis,
                         interleaved=True)
    assert out_b.shape == (seq4, dim4) and out_b.dtype == jnp.bfloat16
    assert jnp.allclose(out_b.astype(jnp.float32), ref_b, atol=1e-2, rtol=1e-2)

    print("KERNEL_OK")
</pallas_src>

<mosaic_0001>
module attributes {stable_mosaic.version = 11 : i64} {
  func.func @_lane_dense_iota_kernel(%arg0: i32, %arg1: memref<1x128xf32, #tpu.memory_space<vmem>>, %arg2: memref<1x128xf32, #tpu.memory_space<vmem>>, %arg3: memref<2x128xf32, #tpu.memory_space<vmem>>) attributes {dimension_semantics = [#tpu.dimension_semantics<parallel>], iteration_bounds = array<i64: 1>, scalar_prefetch = 0 : i64, scratch_operands = 0 : i64, tpu.core_type = #tpu.core_type<tc>, window_params = [{pipeline_mode = #tpu.pipeline_mode<synchronous>, transform_indices = @transform_0, window_bounds = array<i64: 1, 128>}, {pipeline_mode = #tpu.pipeline_mode<synchronous>, transform_indices = @transform_1, window_bounds = array<i64: 1, 128>}, {transform_indices = @transform_2, window_bounds = array<i64: 2, 128>}]} {
    %c2_i32 = arith.constant 2 : i32
    %0 = arith.muli %arg0, %c2_i32 : i32
    %1 = arith.sitofp %0 : i32 to f32
    %2 = tpu.iota {dimensions = array<i32: 0>} : vector<2x128xi32>
    %3 = arith.sitofp %2 : vector<2x128xi32> to vector<2x128xf32>
    %4 = vector.broadcast %1 : f32 to vector<2x128xf32>
    %5 = arith.addf %4, %3 : vector<2x128xf32>
    %cst = arith.constant 4.000000e+00 : f32
    %6 = vector.broadcast %cst : f32 to vector<2x128xf32>
    %7 = arith.mulf %5, %6 : vector<2x128xf32>
    %c0 = arith.constant 0 : index
    %c0_0 = arith.constant 0 : index
    %8 = vector.load %arg2[%c0, %c0_0] : memref<1x128xf32, #tpu.memory_space<vmem>>, vector<1x128xf32>
    %9 = vector.broadcast %8 : vector<1x128xf32> to vector<2x128xf32>
    %10 = arith.addf %7, %9 : vector<2x128xf32>
    %cst_1 = arith.constant 3.000000e+00 : f32
    %11 = vector.broadcast %cst_1 : f32 to vector<2x128xf32>
    %12 = arith.addf %10, %11 : vector<2x128xf32>
    %cst_2 = arith.constant 2.000000e+00 : f32
    %13 = vector.broadcast %cst_2 : f32 to vector<2x128xf32>
    %14 = arith.divf %12, %13 : vector<2x128xf32>
    %c0_3 = arith.constant 0 : index
    %c0_4 = arith.constant 0 : index
    %15 = vector.load %arg1[%c0_3, %c0_4] : memref<1x128xf32, #tpu.memory_space<vmem>>, vector<1x128xf32>
    %16 = vector.broadcast %15 : vector<1x128xf32> to vector<2x128xf32>
    %17 = arith.mulf %14, %16 : vector<2x128xf32>
    %c0_5 = arith.constant 0 : index
    %c0_6 = arith.constant 0 : index
    %18 = vector.load %arg3[%c0_5, %c0_6] : memref<2x128xf32, #tpu.memory_space<vmem>>, vector<2x128xf32>
    tpu.vector_store %arg3[%c0_5, %c0_6], %17 {strides = array<i32>} : memref<2x128xf32, #tpu.memory_space<vmem>>, vector<2x128xf32>,
    return
  }
  func.func @transform_0(%arg0: i32) -> (i32, i32) {
    %c0_i32 = arith.constant 0 : i32
    %c0_i32_0 = arith.constant 0 : i32
    %c0_i32_1 = arith.constant 0 : i32
    return %c0_i32, %c0_i32_0 : i32, i32
  }
  func.func @transform_1(%arg0: i32) -> (i32, i32) {
    %c0_i32 = arith.constant 0 : i32
    %c0_i32_0 = arith.constant 0 : i32
    %c0_i32_1 = arith.constant 0 : i32
    return %c0_i32, %c0_i32_0 : i32, i32
  }
  func.func @transform_2(%arg0: i32) -> (i32, i32) {
    %c0_i32 = arith.constant 0 : i32
    %c0_i32_0 = arith.constant 0 : i32
    return %arg0, %c0_i32 : i32, i32
  }
}

</mosaic_0001>

<bundles_post_ra>
// kernel: tpu_custom_call.1
= control target key start
LH: loop header
LB: loop body
LE: loop exit
PB: predicated region body
PF: predicated region fallthrough
CT: control target
= control target key end

     0   :  { %7 = vsyncpa [#allocation3], 0  ;;  %s163_s0 = inlined_call_operand.hbm [shape: f32[1,128], index: 0, kind: input, shape index: {}]   ;;  %s164_s1 = inlined_call_operand.vmem [shape: f32[1,128], index: 1, kind: input, shape index: {}]   ;;  %s165_s2 = inlined_call_operand.hbm [shape: f32[2,128], index: 2, kind: output, shape index: {}]  }
   0x1   :  { %8 = vsyncpa [#allocation4], 0  ;;  %s119_s9 = smov [#allocation2]   ;;  %s71_s13 = scalar_lea.hbm %s163_s0, 16 }
   0x2   :  { %s15_s10 = sshll.u32 %s119_s9, 4  ;;  %p72_p0 = scmp.ne.s32.totalorder %s163_s0, %s71_s13  ;;  %s16_s10 = int_to_ptr.vmem [resolvable:$true] %s15_s10 }
   0x3   :  { %p75_p1 = scmp.lt.u32.totalorder %s71_s13, %s163_s0 }
   0x5   :  { %p77_p2 = pnand %p75_p1, %p72_p0 }
   0x7   :  { %80 = shalt.err (!%p77_p2)
}
   0x8   :  { %s81_s18 = scalar_lea.vmem %s16_s10, 16  ;;  %s85_s19 = scalar_lea.vmem %s16_s10, 32 }
   0x9   :  { %p82_p3 = scmp.ne.s32.totalorder %s16_s10, %s81_s18  ;;  %p86_p4 = scmp.lt.s32.totalorder %s16_s10, %s16_s10 }
   0xa   :  { %p87_p5 = scmp.lt.s32.totalorder %s85_s19, %s81_s18 }
   0xc   :  { %p88_p6 = por %p87_p5, %p86_p4 }
   0xe   :  { %p89_p7 = pnand %p88_p6, %p82_p3 }
  0x10   :  { %92 = shalt.err (!%p89_p7)
}
  0x11   :  { %18 = dma.hbm_to_vmem [thread:$0]  %s163_s0, 16, %s16_s10, [#allocation3]  }
  0x12   :  { %115 = dma.done.wait [#allocation3], 16  }
  0x13   :  { %116 = vsyncadd [#allocation3], 4294967280  ;;  %v26_v0 = vlaneseq  ;;  %v67_v4 = vld [vmem:[%s164_s1] ss:$0 sm:$0xff]  ;;  %s120_s24 = smov [#allocation5]  }
  0x14   :  { %v68_v7 = vld [vmem:[#allocation2] ss:$0 sm:$0xff]  ;;  %s58_s25 = sshll.u32 %s120_s24, 4  ;;  %s59_s25 = int_to_ptr.vmem [resolvable:$true] %s58_s25 }
  0x15   :  { %v27_v1 = vshrl.u32 %v26_v0, 7  ;;  %s93_s0 = scalar_lea.vmem %s59_s25, 32  ;;  %p98_p9 = scmp.lt.s32.totalorder %s59_s25, %s59_s25 }
  0x16   :  { %p94_p8 = scmp.ne.s32.totalorder %s59_s25, %s93_s0  ;;  %p99_p10 = scmp.lt.s32.totalorder %s93_s0, %s93_s0 }
  0x17   :  { %v28_v2 = vcvt.s32.f32 %v27_v1 }
  0x18   :  { %p100_p11 = por %p99_p10, %p98_p9 }
  0x19   :  { %v31_v3 = vmul.f32 4.0, %v28_v2 }
  0x1a   :  { %p101_p12 = pnand %p100_p11, %p94_p8 }
  0x1b   :  { %v39_v5 = vadd.f32 %v67_v4, %v31_v3 }
  0x1d   :  { %v40_v6 = vadd.f32 3.0, %v39_v5 }
  0x1f   :  { %v42_v8 = vmul.f32 0.5, %v40_v6 }
  0x21   :  { %v50_v9 = vmul.f32 %v68_v7, %v42_v8 }
  0x23   :  { %51 = vst [vmem:[#allocation5] sm:$0x3] %v50_v9 }
  0x24   :  { %104 = shalt.err (!%p101_p12)
}
  0x25   :  { %s105_s1 = scalar_lea.hbm %s165_s2, 32 }
  0x26   :  { %p106_p13 = scmp.ne.s32.totalorder %s165_s2, %s105_s1  ;;  %p109_p0 = scmp.lt.u32.totalorder %s105_s1, %s165_s2 }
  0x28   :  { %p111_p1 = pnand %p109_p0, %p106_p13 }
  0x2a   :  { %114 = shalt.err (!%p111_p1)
}
  0x2b   :  { %61 = dma.vmem_to_hbm [thread:$0]  %s59_s25, 32, %s165_s2, [#allocation4]  }
  0x2c   :  { %117 = dma.done.wait [#allocation4], 32  }
  0x2d   :  { %118 = vsyncadd [#allocation4], 4294967264 }
  0x2e   :  { %65 = vsyncpa [#allocation3], 1 }
  0x2f   :  { %66 = vsyncpa [#allocation4], 1 }

</bundles_post_ra>
